<compile_context>
chip_gen: v7x
topology: tpu7x:2x2x1
jax: 0.10.0
libtpu: 0.0.40
codegen_flags: <defaults>
</compile_context>

<pallas_src>
import jax
import jax.numpy as jnp
from jax.experimental import pallas as pl
from jax.experimental.pallas import tpu as pltpu

INPUT_DIM = 128
HIDDEN = 128
OUT_DIM = 3                # cl_mode == 'thickness'
N_HIDDEN_LAYERS = 4
NEG_SLOPE = 0.01           # F.leaky_relu default negative slope
DEFAULT_BATCH_TILE = 1024  # ~0.5 MiB f32 x per buffer; weights ~131 KiB resident


def _cdiv(a, b):
    return -(-a // b)


def _round_up(n, m):
    return _cdiv(n, m) * m


def classifier_kernel(x_ref, wh_ref, bh_ref, w5_ref, b5_ref, o_ref):
    # x arrives f32 or bf16; cast is a no-op for bf16 input.
    h = x_ref[...].astype(jnp.bfloat16)

    # Four hidden layers, unrolled at trace time.  MXU matmul in bf16 with
    # f32 accumulation; bias-add + leaky_relu in f32 (v5e-safe); activation
    # cast to bf16 right after so the next dot's operand is already bf16 and
    # only one copy stays live.
    for l in range(N_HIDDEN_LAYERS):
        y = jnp.dot(h, wh_ref[l], preferred_element_type=jnp.float32)
        y = y + bh_ref[l]                       # [bt, 128] f32 + [1, 128] f32
        y = jnp.where(y > 0, y, NEG_SLOPE * y)  # leaky_relu in f32
        h = y.astype(jnp.bfloat16)

    # Output layer: narrow [bt, 3] result, relu, masked store.
    y = jnp.dot(h, w5_ref[...], preferred_element_type=jnp.float32) + b5_ref[...]
    o_ref[...] = jnp.maximum(y, 0.0).astype(o_ref.dtype)


@jax.jit
def classifier_forward(x, params):
    """x: [B, 128] float32 or bfloat16.  params: output of prepare_params()."""
    B, D = x.shape
    assert D == INPUT_DIM, f"expected feature dim {INPUT_DIM}, got {D}"

    # Tile choice:
    #   * cap at DEFAULT_BATCH_TILE rows (amortizes per-grid-step overhead),
    #   * but never exceed round_up(cdiv(B, 2), 8) so any batch with B > 8
    #     produces >= 2 grid steps -> both v7x TensorCores get work via the
    #     "parallel" dimension semantics.
    # Ragged last tile is handled by Pallas' padded-read / masked-write
    # boundary handling (row-local math only, so padding cannot contaminate
    # valid rows).
    bt = min(DEFAULT_BATCH_TILE, _round_up(_cdiv(B, 2), 8))
    grid = (_cdiv(B, bt),)

    return pl.pallas_call(
        classifier_kernel,
        out_shape=jax.ShapeDtypeStruct((B, OUT_DIM), jnp.float32),
        grid_spec=pltpu.PrefetchScalarGridSpec(
            num_scalar_prefetch=0,
            grid=grid,
            in_specs=[
                # x: streamed per grid step in its native dtype.
                pl.BlockSpec((bt, INPUT_DIM), lambda i: (i, 0)),
                # Stacked hidden weights/biases: constant index_map keeps them
                # VMEM-resident across grid steps (2 inputs instead of 8).
                pl.BlockSpec((N_HIDDEN_LAYERS, HIDDEN, HIDDEN),
                             lambda i: (0, 0, 0)),
                pl.BlockSpec((N_HIDDEN_LAYERS, 1, HIDDEN),
                             lambda i: (0, 0, 0)),
                # Output layer.
                pl.BlockSpec((HIDDEN, OUT_DIM), lambda i: (0, 0)),
                pl.BlockSpec((1, OUT_DIM), lambda i: (0, 0)),
            ],
            out_specs=pl.BlockSpec((bt, OUT_DIM), lambda i: (i, 0)),
        ),
        compiler_params=pltpu.CompilerParams(
            dimension_semantics=("parallel",)),
    )(x, params["wh"], params["bh"], params["w5"], params["b5"])


def init_params(key):
    """Deterministic PyTorch-style init.  Weights as [in, out] (transposed)."""
    ks = jax.random.split(key, 10)

    def linear(kw, kb, fan_in, fan_out):
        bound = 1.0 / jnp.sqrt(fan_in)
        w = jax.random.uniform(kw, (fan_in, fan_out), jnp.float32, -bound, bound)
        b = jax.random.uniform(kb, (fan_out,), jnp.float32, -bound, bound)
        return w, b

    p = {}
    p["w1"], p["b1"] = linear(ks[0], ks[1], INPUT_DIM, HIDDEN)
    p["w2"], p["b2"] = linear(ks[2], ks[3], HIDDEN, HIDDEN)
    p["w3"], p["b3"] = linear(ks[4], ks[5], HIDDEN, HIDDEN)
    p["w4"], p["b4"] = linear(ks[6], ks[7], HIDDEN, HIDDEN)
    p["w5"], p["b5"] = linear(ks[8], ks[9], HIDDEN, OUT_DIM)
    return p


def prepare_params(params_f32):
    """One-time, outside the jitted forward:
       * hidden weights stacked into [4,128,128] bf16,
       * hidden biases stacked into [4,1,128] f32,
       * output layer: bf16 [128,3] weight, f32 [1,3] bias."""
    wh = jnp.stack([params_f32[f"w{i}"] for i in (1, 2, 3, 4)], axis=0)
    bh = jnp.stack([params_f32[f"b{i}"].reshape(1, -1) for i in (1, 2, 3, 4)],
                   axis=0)
    return {
        "wh": wh.astype(jnp.bfloat16),
        "bh": bh.astype(jnp.float32),
        "w5": params_f32["w5"].astype(jnp.bfloat16),
        "b5": params_f32["b5"].astype(jnp.float32).reshape(1, -1),
    }


def reference_forward(x, params_f32):
    """Pure-JAX f32 reference of the PyTorch forward."""
    h = x
    for i in (1, 2, 3, 4):
        h = h @ params_f32[f"w{i}"] + params_f32[f"b{i}"]
        h = jnp.where(h > 0, h, NEG_SLOPE * h)
    y = h @ params_f32["w5"] + params_f32["b5"]
    return jnp.maximum(y, 0.0)


if __name__ == "__main__":
    key = jax.random.PRNGKey(0)
    kx, kp = jax.random.split(key)

    params_f32 = init_params(kp)
    params = prepare_params(params_f32)

    # Test 1: small batch, f32 input.  bt=8 -> 2 grid steps (both v7x TCs).
    B_small = 16
    x_small = jax.random.normal(kx, (B_small, INPUT_DIM), jnp.float32)
    out_small = jax.block_until_ready(classifier_forward(x_small, params))
    ref_small = reference_forward(x_small, params_f32)
    assert out_small.shape == (B_small, OUT_DIM)
    # bf16 matmul operands / bf16 activation carry vs f32 reference.
    assert jnp.allclose(out_small, ref_small, atol=3e-2, rtol=3e-2), \
        "small-batch mismatch vs reference"

    # Test 2: ragged batch with a bf16 input stream (emulating a bf16
    # upstream producer — no wrapper-side cast inside the forward).
    # bt=152 -> grid of 2 with a masked 148-row last tile.
    B_big = 300
    x_big_f32 = jax.random.normal(jax.random.PRNGKey(1), (B_big, INPUT_DIM),
                                  jnp.float32)
    x_big_bf16 = x_big_f32.astype(jnp.bfloat16)
    out_big = jax.block_until_ready(classifier_forward(x_big_bf16, params))
    ref_big = reference_forward(x_big_bf16.astype(jnp.float32), params_f32)
    assert out_big.shape == (B_big, OUT_DIM)
    assert jnp.allclose(out_big, ref_big, atol=3e-2, rtol=3e-2), \
        "ragged-batch (bf16 input) mismatch vs reference"

    print("KERNEL_OK")
</pallas_src>

<mosaic_0001>
module attributes {stable_mosaic.version = 11 : i64} {
  func.func @classifier_kernel(%arg0: i32, %arg1: memref<8x128xf32, #tpu.memory_space<vmem>>, %arg2: memref<4x128x128xbf16, #tpu.memory_space<vmem>>, %arg3: memref<4x1x128xf32, #tpu.memory_space<vmem>>, %arg4: memref<128x3xbf16, #tpu.memory_space<vmem>>, %arg5: memref<1x3xf32, #tpu.memory_space<vmem>>, %arg6: memref<8x3xf32, #tpu.memory_space<vmem>>) attributes {dimension_semantics = [#tpu.dimension_semantics<parallel>], iteration_bounds = array<i64: 2>, scalar_prefetch = 0 : i64, scratch_operands = 0 : i64, tpu.core_type = #tpu.core_type<tc>, window_params = [{transform_indices = @transform_0, window_bounds = array<i64: 8, 128>}, {pipeline_mode = #tpu.pipeline_mode<synchronous>, transform_indices = @transform_1, window_bounds = array<i64: 4, 128, 128>}, {pipeline_mode = #tpu.pipeline_mode<synchronous>, transform_indices = @transform_2, window_bounds = array<i64: 4, 1, 128>}, {pipeline_mode = #tpu.pipeline_mode<synchronous>, transform_indices = @transform_3, window_bounds = array<i64: 128, 3>}, {pipeline_mode = #tpu.pipeline_mode<synchronous>, transform_indices = @transform_4, window_bounds = array<i64: 1, 3>}, {transform_indices = @transform_5, window_bounds = array<i64: 8, 3>}]} {
    %c0 = arith.constant 0 : index
    %c0_0 = arith.constant 0 : index
    %0 = vector.load %arg1[%c0, %c0_0] : memref<8x128xf32, #tpu.memory_space<vmem>>, vector<8x128xf32>
    %1 = arith.truncf %0 : vector<8x128xf32> to vector<8x128xbf16>
    %c0_1 = arith.constant 0 : index
    %c0_2 = arith.constant 0 : index
    %c0_3 = arith.constant 0 : index
    %2 = vector.load %arg2[%c0_1, %c0_2, %c0_3] : memref<4x128x128xbf16, #tpu.memory_space<vmem>>, vector<1x128x128xbf16>
    %3 = vector.shape_cast %2 : vector<1x128x128xbf16> to vector<128x128xbf16>
    %cst = arith.constant dense<0.000000e+00> : vector<8x128xf32>
    %4 = tpu.matmul %1, %3, %cst {dimension_numbers = #tpu.dot_dimension_numbers<[1], [0], [0], [1], [0, 0, 1, 1], [], []>} : vector<8x128xbf16>, vector<128x128xbf16>, vector<8x128xf32> -> vector<8x128xf32>
    %c0_4 = arith.constant 0 : index
    %c0_5 = arith.constant 0 : index
    %c0_6 = arith.constant 0 : index
    %5 = vector.load %arg3[%c0_4, %c0_5, %c0_6] : memref<4x1x128xf32, #tpu.memory_space<vmem>>, vector<1x1x128xf32>
    %6 = vector.shape_cast %5 : vector<1x1x128xf32> to vector<1x128xf32>
    %7 = vector.broadcast %6 : vector<1x128xf32> to vector<8x128xf32>
    %8 = arith.addf %4, %7 : vector<8x128xf32>
    %cst_7 = arith.constant 0.000000e+00 : f32
    %9 = vector.broadcast %cst_7 : f32 to vector<8x128xf32>
    %10 = arith.cmpf ogt, %8, %9 : vector<8x128xf32>
    %cst_8 = arith.constant 0.00999999977 : f32
    %11 = vector.broadcast %cst_8 : f32 to vector<8x128xf32>
    %12 = arith.mulf %11, %8 : vector<8x128xf32>
    %13 = arith.select %10, %8, %12 : vector<8x128xi1>, vector<8x128xf32>
    %14 = arith.truncf %13 : vector<8x128xf32> to vector<8x128xbf16>
    %c1 = arith.constant 1 : index
    %c0_9 = arith.constant 0 : index
    %c0_10 = arith.constant 0 : index
    %15 = vector.load %arg2[%c1, %c0_9, %c0_10] : memref<4x128x128xbf16, #tpu.memory_space<vmem>>, vector<1x128x128xbf16>
    %16 = vector.shape_cast %15 : vector<1x128x128xbf16> to vector<128x128xbf16>
    %cst_11 = arith.constant dense<0.000000e+00> : vector<8x128xf32>
    %17 = tpu.matmul %14, %16, %cst_11 {dimension_numbers = #tpu.dot_dimension_numbers<[1], [0], [0], [1], [0, 0, 1, 1], [], []>} : vector<8x128xbf16>, vector<128x128xbf16>, vector<8x128xf32> -> vector<8x128xf32>
    %c1_12 = arith.constant 1 : index
    %c0_13 = arith.constant 0 : index
    %c0_14 = arith.constant 0 : index
    %18 = vector.load %arg3[%c1_12, %c0_13, %c0_14] : memref<4x1x128xf32, #tpu.memory_space<vmem>>, vector<1x1x128xf32>
    %19 = vector.shape_cast %18 : vector<1x1x128xf32> to vector<1x128xf32>
    %20 = vector.broadcast %19 : vector<1x128xf32> to vector<8x128xf32>
    %21 = arith.addf %17, %20 : vector<8x128xf32>
    %cst_15 = arith.constant 0.000000e+00 : f32
    %22 = vector.broadcast %cst_15 : f32 to vector<8x128xf32>
    %23 = arith.cmpf ogt, %21, %22 : vector<8x128xf32>
    %cst_16 = arith.constant 0.00999999977 : f32
    %24 = vector.broadcast %cst_16 : f32 to vector<8x128xf32>
    %25 = arith.mulf %24, %21 : vector<8x128xf32>
    %26 = arith.select %23, %21, %25 : vector<8x128xi1>, vector<8x128xf32>
    %27 = arith.truncf %26 : vector<8x128xf32> to vector<8x128xbf16>
    %c2 = arith.constant 2 : index
    %c0_17 = arith.constant 0 : index
    %c0_18 = arith.constant 0 : index
    %28 = vector.load %arg2[%c2, %c0_17, %c0_18] : memref<4x128x128xbf16, #tpu.memory_space<vmem>>, vector<1x128x128xbf16>
    %29 = vector.shape_cast %28 : vector<1x128x128xbf16> to vector<128x128xbf16>
    %cst_19 = arith.constant dense<0.000000e+00> : vector<8x128xf32>
    %30 = tpu.matmul %27, %29, %cst_19 {dimension_numbers = #tpu.dot_dimension_numbers<[1], [0], [0], [1], [0, 0, 1, 1], [], []>} : vector<8x128xbf16>, vector<128x128xbf16>, vector<8x128xf32> -> vector<8x128xf32>
    %c2_20 = arith.constant 2 : index
    %c0_21 = arith.constant 0 : index
    %c0_22 = arith.constant 0 : index
    %31 = vector.load %arg3[%c2_20, %c0_21, %c0_22] : memref<4x1x128xf32, #tpu.memory_space<vmem>>, vector<1x1x128xf32>
    %32 = vector.shape_cast %31 : vector<1x1x128xf32> to vector<1x128xf32>
    %33 = vector.broadcast %32 : vector<1x128xf32> to vector<8x128xf32>
    %34 = arith.addf %30, %33 : vector<8x128xf32>
    %cst_23 = arith.constant 0.000000e+00 : f32
    %35 = vector.broadcast %cst_23 : f32 to vector<8x128xf32>
    %36 = arith.cmpf ogt, %34, %35 : vector<8x128xf32>
    %cst_24 = arith.constant 0.00999999977 : f32
    %37 = vector.broadcast %cst_24 : f32 to vector<8x128xf32>
    %38 = arith.mulf %37, %34 : vector<8x128xf32>
    %39 = arith.select %36, %34, %38 : vector<8x128xi1>, vector<8x128xf32>
    %40 = arith.truncf %39 : vector<8x128xf32> to vector<8x128xbf16>
    %c3 = arith.constant 3 : index
    %c0_25 = arith.constant 0 : index
    %c0_26 = arith.constant 0 : index
    %41 = vector.load %arg2[%c3, %c0_25, %c0_26] : memref<4x128x128xbf16, #tpu.memory_space<vmem>>, vector<1x128x128xbf16>
    %42 = vector.shape_cast %41 : vector<1x128x128xbf16> to vector<128x128xbf16>
    %cst_27 = arith.constant dense<0.000000e+00> : vector<8x128xf32>
    %43 = tpu.matmul %40, %42, %cst_27 {dimension_numbers = #tpu.dot_dimension_numbers<[1], [0], [0], [1], [0, 0, 1, 1], [], []>} : vector<8x128xbf16>, vector<128x128xbf16>, vector<8x128xf32> -> vector<8x128xf32>
    %c3_28 = arith.constant 3 : index
    %c0_29 = arith.constant 0 : index
    %c0_30 = arith.constant 0 : index
    %44 = vector.load %arg3[%c3_28, %c0_29, %c0_30] : memref<4x1x128xf32, #tpu.memory_space<vmem>>, vector<1x1x128xf32>
    %45 = vector.shape_cast %44 : vector<1x1x128xf32> to vector<1x128xf32>
    %46 = vector.broadcast %45 : vector<1x128xf32> to vector<8x128xf32>
    %47 = arith.addf %43, %46 : vector<8x128xf32>
    %cst_31 = arith.constant 0.000000e+00 : f32
    %48 = vector.broadcast %cst_31 : f32 to vector<8x128xf32>
    %49 = arith.cmpf ogt, %47, %48 : vector<8x128xf32>
    %cst_32 = arith.constant 0.00999999977 : f32
    %50 = vector.broadcast %cst_32 : f32 to vector<8x128xf32>
    %51 = arith.mulf %50, %47 : vector<8x128xf32>
    %52 = arith.select %49, %47, %51 : vector<8x128xi1>, vector<8x128xf32>
    %53 = arith.truncf %52 : vector<8x128xf32> to vector<8x128xbf16>
    %c0_33 = arith.constant 0 : index
    %c0_34 = arith.constant 0 : index
    %54 = vector.load %arg4[%c0_33, %c0_34] : memref<128x3xbf16, #tpu.memory_space<vmem>>, vector<128x3xbf16>
    %cst_35 = arith.constant dense<0.000000e+00> : vector<8x3xf32>
    %55 = tpu.matmul %53, %54, %cst_35 {dimension_numbers = #tpu.dot_dimension_numbers<[1], [0], [0], [1], [0, 0, 1, 1], [], []>} : vector<8x128xbf16>, vector<128x3xbf16>, vector<8x3xf32> -> vector<8x3xf32>
    %c0_36 = arith.constant 0 : index
    %c0_37 = arith.constant 0 : index
    %56 = vector.load %arg5[%c0_36, %c0_37] : memref<1x3xf32, #tpu.memory_space<vmem>>, vector<1x3xf32>
    %57 = vector.broadcast %56 : vector<1x3xf32> to vector<8x3xf32>
    %58 = arith.addf %55, %57 : vector<8x3xf32>
    %cst_38 = arith.constant 0.000000e+00 : f32
    %59 = vector.broadcast %cst_38 : f32 to vector<8x3xf32>
    %60 = arith.maximumf %58, %59 : vector<8x3xf32>
    %c0_39 = arith.constant 0 : index
    %c0_40 = arith.constant 0 : index
    %61 = vector.load %arg6[%c0_39, %c0_40] : memref<8x3xf32, #tpu.memory_space<vmem>>, vector<8x3xf32>
    tpu.vector_store %arg6[%c0_39, %c0_40], %60 {strides = array<i32>} : memref<8x3xf32, #tpu.memory_space<vmem>>, vector<8x3xf32>,
    return
  }
  func.func @transform_0(%arg0: i32) -> (i32, i32) {
    %c0_i32 = arith.constant 0 : i32
    %c0_i32_0 = arith.constant 0 : i32
    return %arg0, %c0_i32 : i32, i32
  }
  func.func @transform_1(%arg0: i32) -> (i32, i32, i32) {
    %c0_i32 = arith.constant 0 : i32
    %c0_i32_0 = arith.constant 0 : i32
    %c0_i32_1 = arith.constant 0 : i32
    %c0_i32_2 = arith.constant 0 : i32
    return %c0_i32, %c0_i32_0, %c0_i32_1 : i32, i32, i32
  }
  func.func @transform_2(%arg0: i32) -> (i32, i32, i32) {
    %c0_i32 = arith.constant 0 : i32
    %c0_i32_0 = arith.constant 0 : i32
    %c0_i32_1 = arith.constant 0 : i32
    %c0_i32_2 = arith.constant 0 : i32
    return %c0_i32, %c0_i32_0, %c0_i32_1 : i32, i32, i32
  }
  func.func @transform_3(%arg0: i32) -> (i32, i32) {
    %c0_i32 = arith.constant 0 : i32
    %c0_i32_0 = arith.constant 0 : i32
    %c0_i32_1 = arith.constant 0 : i32
    return %c0_i32, %c0_i32_0 : i32, i32
  }
  func.func @transform_4(%arg0: i32) -> (i32, i32) {
    %c0_i32 = arith.constant 0 : i32
    %c0_i32_0 = arith.constant 0 : i32
    %c0_i32_1 = arith.constant 0 : i32
    return %c0_i32, %c0_i32_0 : i32, i32
  }
  func.func @transform_5(%arg0: i32) -> (i32, i32) {
    %c0_i32 = arith.constant 0 : i32
    %c0_i32_0 = arith.constant 0 : i32
    return %arg0, %c0_i32 : i32, i32
  }
}

</mosaic_0001>

<bundles_post_ra>
// kernel: classifier_forward.1
= control target key start
LH: loop header
LB: loop body
LE: loop exit
PB: predicated region body
PF: predicated region fallthrough
CT: control target
= control target key end

     0   :  { %10 = vsyncpa [#allocation3], 0  ;;  %s1225_s18 = smov 0   ;;  %s1377_s0 = inlined_call_operand.vmem [shape: f32[16,128], index: 0, kind: input, shape index: {}]   ;;  %s1378_s1 = inlined_call_operand.hbm [shape: bf16[4,128,128], index: 1, kind: input, shape index: {}]   ;;  %s1379_s2 = inlined_call_operand.vmem [shape: f32[4,1,128], index: 2, kind: input, shape index: {}]   ;;  %s1380_s3 = inlined_call_operand.vmem [shape: bf16[128,3], index: 3, kind: input, shape index: {}]   ;;  %s1381_s4 = inlined_call_operand.vmem [shape: f32[1,3], index: 4, kind: input, shape index: {}]   ;;  %s1382_s5 = inlined_call_operand.vmem [shape: f32[16,3], index: 5, kind: output, shape index: {}]  }
   0x1 LB: > { %s1231_s19 = sadd.s32 4294967295, %s1188_s18   ;;  %p885_p0 = scmp.ge.s32.totalorder %s1188_s18, 1  ;;  %s1188_s18 = sphi %s1225_s18, %s16_s18  }
   0x2   : > { %p157_p1 = scmp.lt.s32.totalorder %s1188_s18, 3  ;;  %s1190_s20 = smov [#allocation2]  }
   0x3   : > { %s169_s21 = sshll.u32 %s1190_s20, 4  ;;  %p1383_p3 = scmp.eq.s32.totalorder %s1231_s19, 0  ;;  %s170_s21 = int_to_ptr.vmem [resolvable:$true] %s169_s21 }
   0x4   : > { %p1235_p2 = pnand %p885_p0, %p157_p1  ;;  %s1150_s26 = scalar_lea.hbm %s1378_s1, 4096 }
   0x5   : > { %p1151_p6 = scmp.ne.s32.totalorder %s1378_s1, %s1150_s26  ;;  %p1157_p10 = scmp.lt.u32.totalorder %s1150_s26, %s1378_s1 }
   0x6   : > { %s1385_s22 = scalar_select %p1235_p2, 1, 0 }
   0x7   : > { %p1091_p4 = pneg %p1235_p2 }
   0x9   : > { %p1244_p5 = pnand %p1383_p3, %p1091_p4 }
   0xb   : > { %p1152_p7 = pneg %p1244_p5 }
   0xd   : > { %p1153_p8 = pnand %p1152_p7, %p1151_p6 }
   0xf   : > { %p1154_p9 = pneg %p1153_p8 }
  0x11   : > { %p1159_p11 = pnand %p1157_p10, %p1154_p9 }
  0x13   : > { %1162 = shalt.err (!%p1159_p11)
}
  0x14   : > { %s1163_s6 = scalar_lea.vmem %s170_s21, 4096  ;;  %p1171_p1 = scmp.lt.s32.totalorder %s170_s21, %s170_s21 }
  0x15   : > { %p1164_p12 = scmp.ne.s32.totalorder %s170_s21, %s1163_s6  ;;  %p1172_p4 = scmp.lt.s32.totalorder %s1163_s6, %s1163_s6 }
  0x17   : > { %p1166_p13 = pnand %p1164_p12, %p1152_p7  ;;  %p1173_p3 = por %p1172_p4, %p1171_p1 }
  0x19   : > { %p1167_p0 = pneg %p1166_p13 }
  0x1b   : > { %p1174_p2 = pnand %p1173_p3, %p1167_p0 }
  0x1d   : > { %1177 = shalt.err (!%p1174_p2)
}
  0x1e   : > { %s1191_s7 = smov 64   ;;  %s1192_s8 = smov 4  }
  0x1f   : > { %1094 = dma.hbm_to_vmem [thread:$0]  (!%p1244_p5), %s1378_s1, 4096, %s170_s21, [#allocation3], %s1191_s7, %s1191_s7, %s1192_s8  }
  0x20   : > { %p1387_p6 = scmp.ne.s32.totalorder %s1385_s22, 0 }
  0x21   : > { %p1388_p8 = scmp.eq.s32.totalorder (!%p1387_p6), %s1231_s19, 0 }
  0x22   : > { %201 = sbr.rel (%p1387_p6) target bundleno = 1169 (0x491), region = 40 }
  0x29   : > { %1183 = dma.done.wait (%p1388_p8), [#allocation3], 4096   ;;  %p1389_p7 = pmov %p1388_p8 }
  0x2a   : > { %v1193_v0 = vmov 0.0   ;;  %vm1194_vm0 = vmmov 0   ;;  %v1110_v1 = vld [vmem:[#allocation2] sm:$0xff]   ;;  %v1111_v2 = vld [vmem:[#allocation2 + $0x8] sm:$0xff]   ;;  %v1112_v3 = vld [vmem:[#allocation2 + $0x10] sm:$0xff]   ;;  %p227_p2 = scmp.lt.s32.totalorder %s1231_s19, 1 }
  0x2b   : > { %1185 = vsyncadd (%p1389_p7), [#allocation3], 4294963200  ;;  %987 = vmatprep.subr.bf16.mxu0 %v1193_v0  ;;  %1003 = vmatprep.mubr.msk.bf16.mxu0 %vm1194_vm0, %v1193_v0  ;;  %v1118_v4 = vld [vmem:[#allocation2 + $0x40] sm:$0xff]   ;;  %v1113_v5 = vld [vmem:[#allocation2 + $0x18] sm:$0xff]   ;;  %vm816_vm5 = vcmask 23552  }
  0x2c   : > { %1007 = vmatprep.subr.bf16.mxu1 %v1193_v0  ;;  %1023 = vmatprep.mubr.msk.bf16.mxu1 %vm1194_vm0, %v1193_v0  ;;  %s1391_s19 = smov (!%p227_p2, %s1231_s19), 1  ;;  %v1119_v6 = vld [vmem:[#allocation2 + $0x48] sm:$0xff]   ;;  %v1114_v7 = vld [vmem:[#allocation2 + $0x20] sm:$0xff]   ;;  %v1120_v8 = vld [vmem:[#allocation2 + $0x50] sm:$0xff]  }
  0x2d   : > { %988 = vmatpush3.bf16.msra.mxu0 %v1110_v1  ;;  %1008 = vmatpush3.bf16.msra.mxu1 %v1118_v4  ;;  %s890_s11 = sshll.u32 %s1391_s19, 3  ;;  %v1115_v9 = vld [vmem:[#allocation2 + $0x28] sm:$0xff]   ;;  %v1121_v10 = vld [vmem:[#allocation2 + $0x58] sm:$0xff]   ;;  %v1116_v11 = vld [vmem:[#allocation2 + $0x30] sm:$0xff]  }
  0x2e   : > { %989 = vmatprep.subr.bf16.mxu0 %v1193_v0  ;;  %1009 = vmatprep.subr.bf16.mxu1 %v1193_v0  ;;  %s230_s14 = scalar_lea.vmem %s1377_s0, %s890_s11  ;;  %v1122_v12 = vld [vmem:[#allocation2 + $0x60] sm:$0xff]   ;;  %v1117_v13 = vld [vmem:[#allocation2 + $0x38] sm:$0xff]   ;;  %v1123_v15 = vld [vmem:[#allocation2 + $0x68] sm:$0xff]   ;;  %s234_s23 = scalar_lea.vmem %s1382_s5, %s890_s11 }
  0x2f   : > { %v236_v14 = vld [vmem:[%s230_s14] sm:$0xff]  ;;  %v1124_v17 = vld [vmem:[#allocation2 + $0x70] sm:$0xff]   ;;  %v1125_v18 = vld [vmem:[#allocation2 + $0x78] sm:$0xff]  }
  0x30   : > { %v237_v16 = vpack.c.bf16 %v236_v14, %v236_v14  ;;  %v1126_v19 = vld [vmem:[#allocation2 + $0x80] sm:$0xff]   ;;  %v1127_v20 = vld [vmem:[#allocation2 + $0x88] sm:$0xff]   ;;  %v1128_v21 = vld [vmem:[#allocation2 + $0x90] sm:$0xff]  }
  0x31   : > { %990 = vmatpush3.bf16.msra.mxu0 %v1111_v2  ;;  %1010 = vmatpush3.bf16.msra.mxu1 %v1119_v6  ;;  %v1129_v22 = vld [vmem:[#allocation2 + $0x98] sm:$0xff]   ;;  %v1130_v23 = vld [vmem:[#allocation2 + $0xa0] sm:$0xff]   ;;  %v1131_v24 = vld [vmem:[#allocation2 + $0xa8] sm:$0xff]  }
  0x32   : > { %991 = vmatprep.subr.bf16.mxu0 %v1193_v0  ;;  %1011 = vmatprep.subr.bf16.mxu1 %v1193_v0  ;;  %v892_v25 = vld [vmem:[%s1379_s2] ss:$0 sm:$0xff]  ;;  %v1132_v34 = vld [vmem:[#allocation2 + $0xb0] sm:$0xff]   ;;  %v1133_v35 = vld [vmem:[#allocation2 + $0xb8] sm:$0xff]  }
  0x33   : > { %v1134_v36 = vld [vmem:[#allocation2 + $0xc0] sm:$0xff]   ;;  %v1135_v37 = vld [vmem:[#allocation2 + $0xc8] sm:$0xff]   ;;  %v1136_v38 = vld [vmem:[#allocation2 + $0xd0] sm:$0xff]  }
  0x34   : > { %v1137_v39 = vld [vmem:[#allocation2 + $0xd8] sm:$0xff]   ;;  %v1138_v40 = vld [vmem:[#allocation2 + $0xe0] sm:$0xff]   ;;  %v1139_v41 = vld [vmem:[#allocation2 + $0xe8] sm:$0xff]  }
  0x35   : > { %992 = vmatpush3.bf16.msra.mxu0 %v1112_v3  ;;  %1012 = vmatpush3.bf16.msra.mxu1 %v1120_v8  ;;  %v902_v42 = vld [vmem:[%s1379_s2 + $0x1] ss:$0 sm:$0xff]  ;;  %v1140_v51 = vld [vmem:[#allocation2 + $0xf0] sm:$0xff]   ;;  %v1141_v52 = vld [vmem:[#allocation2 + $0xf8] sm:$0xff]  }
  0x36   : > { %993 = vmatprep.subr.bf16.mxu0 %v1193_v0  ;;  %1013 = vmatprep.subr.bf16.mxu1 %v1193_v0  ;;  %v1142_v53 = vld [vmem:[%s1380_s3] sm:$0xff]   ;;  %v1143_v54 = vld [vmem:[%s1380_s3 + $0x8] sm:$0xff]   ;;  %v1144_v55 = vld [vmem:[%s1380_s3 + $0x10] sm:$0xff]  }
  0x37   : > { %v1145_v56 = vld [vmem:[%s1380_s3 + $0x18] sm:$0xff]   ;;  %v1146_v57 = vld [vmem:[%s1380_s3 + $0x20] sm:$0xff]   ;;  %v1147_v58 = vld [vmem:[%s1380_s3 + $0x28] sm:$0xff]  }
  0x38   : > { %v912_v59 = vld [vmem:[%s1379_s2 + $0x2] ss:$0 sm:$0xff]  ;;  %v1149_v6 = vld [vmem:[%s1380_s3 + $0x38] sm:$0xff]  }
  0x39   : > { %994 = vmatpush3.bf16.msra.mxu0 %v1113_v5  ;;  %1014 = vmatpush3.bf16.msra.mxu1 %v1121_v10  ;;  %v1148_v5 = vld [vmem:[%s1380_s3 + $0x30] sm:$0xff]  }
  0x3a   : > { %995 = vmatprep.subr.bf16.mxu0 %v1193_v0  ;;  %1015 = vmatprep.subr.bf16.mxu1 %v1193_v0 }
  0x3d   : > { %996 = vmatpush3.bf16.msra.mxu0 %v1114_v7  ;;  %1016 = vmatpush3.bf16.msra.mxu1 %v1122_v12  ;;  %v922_v7 = vld [vmem:[%s1379_s2 + $0x3] ss:$0 sm:$0xff] }
  0x3e   : > { %997 = vmatprep.subr.bf16.mxu0 %v1193_v0  ;;  %1017 = vmatprep.subr.bf16.mxu1 %v1193_v0 }
  0x41   : > { %998 = vmatpush3.bf16.msra.mxu0 %v1115_v9  ;;  %1018 = vmatpush3.bf16.msra.mxu1 %v1123_v15 }
  0x42   : > { %999 = vmatprep.subr.bf16.mxu0 %v1193_v0  ;;  %1019 = vmatprep.subr.bf16.mxu1 %v1193_v0 }
  0x45   : > { %1000 = vmatpush3.bf16.msra.mxu0 %v1116_v11  ;;  %1020 = vmatpush3.bf16.msra.mxu1 %v1124_v17 }
  0x46   : > { %1001 = vmatprep.subr.bf16.mxu0 %v1193_v0  ;;  %1021 = vmatprep.subr.bf16.mxu1 %v1193_v0 }
  0x49   : > { %1002 = vmatpush3.bf16.msra.mxu0 %v1117_v13  ;;  %1022 = vmatpush3.bf16.msra.mxu1 %v1125_v18 }
  0x4a   : > { %1027 = vmatprep.subr.bf16.mxu0 %v1193_v0  ;;  %1047 = vmatprep.subr.bf16.mxu1 %v1193_v0 }
  0x4c   : > { %1004 = vmatmul.mubr.bf16.vlgmr.msra.gmra.mrb[0].mxu0 %v237_v16 }
  0x4d   : > { %1043 = vmatprep.mubr.msk.bf16.mxu0 %vm1194_vm0, %v1193_v0  ;;  %1028 = vmatpush3.bf16.msra.mxu0 %v1126_v19 }
  0x4e   : > { %1029 = vmatprep.subr.bf16.mxu0 %v1193_v0 }
  0x51   : > { %1030 = vmatpush3.bf16.msra.mxu0 %v1127_v20 }
  0x52   : > { %1031 = vmatprep.subr.bf16.mxu0 %v1193_v0 }
  0x55   : > { %1032 = vmatpush3.bf16.msra.mxu0 %v1128_v21 }
  0x56   : > { %1033 = vmatprep.subr.bf16.mxu0 %v1193_v0 }
  0x59   : > { %1034 = vmatpush3.bf16.msra.mxu0 %v1129_v22 }
  0x5a   : > { %1035 = vmatprep.subr.bf16.mxu0 %v1193_v0 }
  0x5d   : > { %1036 = vmatpush3.bf16.msra.mxu0 %v1130_v23 }
  0x5e   : > { %1037 = vmatprep.subr.bf16.mxu0 %v1193_v0 }
  0x61   : > { %1038 = vmatpush3.bf16.msra.mxu0 %v1131_v24 }
  0x62   : > { %1039 = vmatprep.subr.bf16.mxu0 %v1193_v0 }
  0x65   : > { %1040 = vmatpush3.bf16.msra.mxu0 %v1132_v34 }
  0x66   : > { %1041 = vmatprep.subr.bf16.mxu0 %v1193_v0 }
  0x69   : > { %1042 = vmatpush3.bf16.msra.mxu0 %v1133_v35 }
  0x6a   : > { %1067 = vmatprep.subr.bf16.mxu0 %v1193_v0 }
 0x11f   : > { %v343_v26 = vpop.f32.mrb[0].mxu0 }
 0x120   : > { %v344_v27 = vadd.f32 %v892_v25, %v343_v26  ;;  %v1005_v28 = vpop.f32.mrb[1].mxu0 }
 0x121   : > { %v346_v29 = vpop.f32.mrb[2].mxu0 }
 0x122   : > { %vm349_vm1 = vcmp.gt.f32.partialorder %v344_v27, 0.0  ;;  %v350_v30 = vmul.f32 0.01, %v344_v27  ;;  %v1006_v31 = vpop.f32.mrb[3].mxu0 }
 0x124   : > { %v351_v32 = vsel %vm349_vm1, %v344_v27, %v350_v30 }
 0x125   : > { %v352_v33 = vpack.c.bf16 %v351_v32, %v351_v32 }
 0x127   : > { %1024 = vmatmul.mubr.bf16.vlgmr.msra.gmra.mrb[0].mxu1 %v352_v33 }
 0x128   : > { %1063 = vmatprep.mubr.msk.bf16.mxu1 %vm1194_vm0, %v1193_v0  ;;  %1048 = vmatpush3.bf16.msra.mxu1 %v1134_v36 }
 0x129   : > { %1049 = vmatprep.subr.bf16.mxu1 %v1193_v0 }
 0x12c   : > { %1050 = vmatpush3.bf16.msra.mxu1 %v1135_v37 }
 0x12d   : > { %1051 = vmatprep.subr.bf16.mxu1 %v1193_v0 }
 0x130   : > { %1052 = vmatpush3.bf16.msra.mxu1 %v1136_v38 }
 0x131   : > { %1053 = vmatprep.subr.bf16.mxu1 %v1193_v0 }
 0x134   : > { %1054 = vmatpush3.bf16.msra.mxu1 %v1137_v39 }
 0x135   : > { %1055 = vmatprep.subr.bf16.mxu1 %v1193_v0 }
 0x138   : > { %1056 = vmatpush3.bf16.msra.mxu1 %v1138_v40 }
 0x139   : > { %1057 = vmatprep.subr.bf16.mxu1 %v1193_v0 }
 0x13c   : > { %1058 = vmatpush3.bf16.msra.mxu1 %v1139_v41 }
 0x13d   : > { %1059 = vmatprep.subr.bf16.mxu1 %v1193_v0 }
 0x140   : > { %1060 = vmatpush3.bf16.msra.mxu1 %v1140_v51 }
 0x141   : > { %1061 = vmatprep.subr.bf16.mxu1 %v1193_v0 }
 0x144   : > { %1062 = vmatpush3.bf16.msra.mxu1 %v1141_v52 }
 0x1fa   : > { %v460_v43 = vpop.f32.mrb[0].mxu1 }
 0x1fb   : > { %v461_v44 = vadd.f32 %v902_v42, %v460_v43  ;;  %v1025_v45 = vpop.f32.mrb[1].mxu1 }
 0x1fc   : > { %v463_v46 = vpop.f32.mrb[2].mxu1 }
 0x1fd   : > { %vm466_vm2 = vcmp.gt.f32.partialorder %v461_v44, 0.0  ;;  %v467_v47 = vmul.f32 0.01, %v461_v44  ;;  %v1026_v48 = vpop.f32.mrb[3].mxu1 }
 0x1ff   : > { %v468_v49 = vsel %vm466_vm2, %v461_v44, %v467_v47 }
 0x200   : > { %v469_v50 = vpack.c.bf16 %v468_v49, %v468_v49 }
 0x202   : > { %1044 = vmatmul.mubr.bf16.vlgmr.msra.gmra.mrb[4].mxu0 %v469_v50 }
 0x203   : > { %1083 = vmatprep.mubr.msk.bf16.mxu0 %vm1194_vm0, %v1193_v0  ;;  %1068 = vmatpush3.bf16.msra.mxu0 %v1142_v53 }
 0x204   : > { %1069 = vmatprep.subr.bf16.mxu0 %v1193_v0 }
 0x207   : > { %1070 = vmatpush3.bf16.msra.mxu0 %v1143_v54 }
 0x208   : > { %1071 = vmatprep.subr.bf16.mxu0 %v1193_v0 }
 0x20b   : > { %1072 = vmatpush3.bf16.msra.mxu0 %v1144_v55 }
 0x20c   : > { %1073 = vmatprep.subr.bf16.mxu0 %v1193_v0 }
 0x20f   : > { %1074 = vmatpush3.bf16.msra.mxu0 %v1145_v56 }
 0x210   : > { %1075 = vmatprep.subr.bf16.mxu0 %v1193_v0 }
 0x213   : > { %1076 = vmatpush3.bf16.msra.mxu0 %v1146_v57 }
 0x214   : > { %1077 = vmatprep.subr.bf16.mxu0 %v1193_v0 }
 0x217   : > { %1078 = vmatpush3.bf16.msra.mxu0 %v1147_v58 }
 0x218   : > { %1079 = vmatprep.subr.bf16.mxu0 %v1193_v0 }
 0x21b   : > { %1080 = vmatpush3.bf16.msra.mxu0 %v1148_v5 }
 0x21c   : > { %1081 = vmatprep.subr.bf16.mxu0 %v1193_v0  ;;  %v931_v0 = vld [vmem:[%s1381_s4] ss:$0 sm:$0xff] }
 0x21f   : > { %1082 = vmatpush3.bf16.msra.mxu0 %v1149_v6 }
 0x2d5   : > { %v577_v60 = vpop.f32.mrb[4].mxu0 }
 0x2d6   : > { %v578_v61 = vadd.f32 %v912_v59, %v577_v60  ;;  %v1045_v62 = vpop.f32.mrb[5].mxu0 }
 0x2d7   : > { %v580_v63 = vpop.f32.mrb[6].mxu0 }
 0x2d8   : > { %vm583_vm3 = vcmp.gt.f32.partialorder %v578_v61, 0.0  ;;  %v584_v1 = vmul.f32 0.01, %v578_v61  ;;  %v1046_v2 = vpop.f32.mrb[7].mxu0 }
 0x2da   : > { %v585_v3 = vsel %vm583_vm3, %v578_v61, %v584_v1 }
 0x2db   : > { %v586_v4 = vpack.c.bf16 %v585_v3, %v585_v3 }
 0x2dd   : > { %1064 = vmatmul.mubr.bf16.vlgmr.msra.gmra.mrb[4].mxu1 %v586_v4 }
 0x3b0   : > { %v694_v8 = vpop.f32.mrb[4].mxu1 }
 0x3b1   : > { %v695_v9 = vadd.f32 %v922_v7, %v694_v8  ;;  %v1065_v10 = vpop.f32.mrb[5].mxu1 }
 0x3b2   : > { %v697_v11 = vpop.f32.mrb[6].mxu1 }
 0x3b3   : > { %vm700_vm4 = vcmp.gt.f32.partialorder %v695_v9, 0.0  ;;  %v701_v12 = vmul.f32 0.01, %v695_v9  ;;  %v1066_v13 = vpop.f32.mrb[7].mxu1 }
 0x3b5   : > { %v702_v14 = vsel %vm700_vm4, %v695_v9, %v701_v12 }
 0x3b6   : > { %v703_v15 = vpack.c.bf16 %v702_v14, %v702_v14 }
 0x3b8   : > { %1084 = vmatmul.mubr.bf16.vlgmr.msra.gmra.mrb[8].mxu0 %v703_v15 }
 0x48b   : > { %v809_v16 = vpop.f32.mrb[8].mxu0 }
 0x48c   : > { %v810_v17 = vadd.f32 %v931_v0, %v809_v16  ;;  %v1085_v18 = vpop.f32.mrb[9].mxu0 }
 0x48d   : > { %v812_v19 = vpop.f32.mrb[10].mxu0 }
 0x48e   : > { %v815_v20 = vmax.f32 %v810_v17, 0.0  ;;  %v1086_v21 = vpop.f32.mrb[11].mxu0 }
 0x490   : > { %817 = vst.msk [vmem:[%s234_s23] sm:$0xff] %vm816_vm5, %v815_v20 }
 0x491 PF: > { %s16_s18 = sadd.s32 1, %s1188_s18  }
 0x492   : > { %p13_p3 = scmp.ge.s32.totalorder %s16_s18, 4  }
 0x494   :  { %15 = sbr.rel (!%p13_p3) target bundleno = 1 (0x1), region = 81 }
 0x49b   :  { %837 = vsyncpa [#allocation3], 1 }
 0x49c   :  { %839 = vsyncpa [#allocation3 + $0x1], 1 }

</bundles_post_ra>
